<compile_context>
chip_gen: v5e
topology: v5e:2x2
jax: 0.10.0
libtpu: 0.0.40
codegen_flags: <defaults>
</compile_context>

<pallas_src>
import functools
import math

import jax
import jax.numpy as jnp
import numpy as np
from jax.experimental import pallas as pl
from jax.experimental.pallas import tpu as pltpu

INPUT_SIZE = 4
HIDDEN_SIZE = 30
OUTPUT_SIZE = 3

# Packed parameter buffer: one lane-dense (72, 128) f32 slab -> one DMA.
# Row offsets are 8-aligned so the static sub-slices are sublane-aligned.
ROW_W1 = 0
ROW_W2 = 32
ROW_W3 = 64
PACK_ROWS = 72           # multiple of 8 sublanes
PACK_COLS = 128          # full lane width -> unmasked, relayout-free tile
BIAS_COL = 32            # bias column (clear of W1 cols 0:4 / W2,W3 cols 0:30)

DEFAULT_MAX_TILE = 4096  # lanes per grid step (multiple of 128); per-tile VMEM
                         # stays well under every generation's scoped limit.
MEGACORE_MIN_TILES = 2   # feed both TensorCores on v7x when the batch allows


def _round_up(n, m):
    return ((n + m - 1) // m) * m


def _sigmoid(x):
    # Single-EUP-op sigmoid: 0.5 * (tanh(x/2) + 1). Keeps the transcendental
    # path on the EUP slot instead of exp + a full-precision VPU divide.
    return 0.5 * jnp.tanh(0.5 * x) + 0.5


def iris_kernel(x_ref, p_ref, o_ref):
    """One batch tile: x_ref (4, TB), p_ref (72, 128) f32, o_ref (3, TB) f32."""
    cdt = x_ref.dtype  # matmul-operand dtype (f32 default, bf16 fast path)

    # Unpack weights/biases from the single packed slab (static slices).
    w1 = p_ref[ROW_W1:ROW_W1 + HIDDEN_SIZE, 0:INPUT_SIZE].astype(cdt)    # (30,4)
    b1 = p_ref[ROW_W1:ROW_W1 + HIDDEN_SIZE, BIAS_COL:BIAS_COL + 1]       # (30,1)
    w2 = p_ref[ROW_W2:ROW_W2 + HIDDEN_SIZE, 0:HIDDEN_SIZE].astype(cdt)   # (30,30)
    b2 = p_ref[ROW_W2:ROW_W2 + HIDDEN_SIZE, BIAS_COL:BIAS_COL + 1]       # (30,1)
    w3 = p_ref[ROW_W3:ROW_W3 + OUTPUT_SIZE, 0:HIDDEN_SIZE].astype(cdt)   # (3,30)
    b3 = p_ref[ROW_W3:ROW_W3 + OUTPUT_SIZE, BIAS_COL:BIAS_COL + 1]       # (3,1)

    x = x_ref[...]                                                       # (4,TB)

    # fc1 + sigmoid (batch in lanes, f32 accumulation).
    h1 = jnp.dot(w1, x, preferred_element_type=jnp.float32) + b1         # (30,TB)
    h1 = _sigmoid(h1)

    # fc2 + sigmoid.
    h2 = jnp.dot(w2, h1.astype(cdt), preferred_element_type=jnp.float32) + b2
    h2 = _sigmoid(h2)

    # fc3 -> logits.
    logits = jnp.dot(w3, h2.astype(cdt), preferred_element_type=jnp.float32) + b3

    # log_softmax over the class (sublane) axis, f32, numerically stable.
    m = jnp.max(logits, axis=0, keepdims=True)
    shifted = logits - m
    lse = jnp.log(jnp.sum(jnp.exp(shifted), axis=0, keepdims=True))
    o_ref[...] = shifted - lse


def _choose_tiling(batch, max_tile):
    """Pick (tile_lanes, num_tiles, padded_batch).

    Every tile is a multiple of 128 lanes and <= max_tile; we aim for at least
    MEGACORE_MIN_TILES tiles when the batch has enough 128-lane chunks (so the
    'parallel' grid axis feeds both v7x TensorCores); padding waste beyond the
    unavoidable 128-lane round-up is at most (num_tiles - 1) chunks.
    """
    assert max_tile % 128 == 0, "max tile must be a multiple of 128 lanes"
    b128 = _round_up(max(batch, 1), 128)
    n_chunks = b128 // 128
    want_tiles = max(math.ceil(b128 / max_tile),
                     min(MEGACORE_MIN_TILES, n_chunks))
    chunks_per_tile = math.ceil(n_chunks / want_tiles)
    tb = chunks_per_tile * 128
    num_tiles = math.ceil(n_chunks / chunks_per_tile)
    return tb, num_tiles, num_tiles * tb


def _pallas_forward(xt, packed, tb, num_tiles, b_pad):
    # Per-sample: 2*(4*30 + 30*30 + 30*3) flops, 2*30 tanh + 3 exp + 1 log
    # transcendentals, 4*in_bytes + 3*4 bytes of HBM traffic (+ weight slab).
    cost = pl.CostEstimate(
        flops=2 * b_pad * (INPUT_SIZE * HIDDEN_SIZE
                           + HIDDEN_SIZE * HIDDEN_SIZE
                           + HIDDEN_SIZE * OUTPUT_SIZE),
        transcendentals=b_pad * (2 * HIDDEN_SIZE + OUTPUT_SIZE + 1),
        bytes_accessed=(b_pad * (INPUT_SIZE * xt.dtype.itemsize
                                 + OUTPUT_SIZE * 4)
                        + PACK_ROWS * PACK_COLS * 4),
    )
    # Shard across TensorCores (v7x) only when there is more than one tile.
    semantics = ("parallel",) if num_tiles >= 2 else ("arbitrary",)
    return pl.pallas_call(
        iris_kernel,
        out_shape=jax.ShapeDtypeStruct((OUTPUT_SIZE, b_pad), jnp.float32),
        grid=(num_tiles,),
        in_specs=[
            pl.BlockSpec((INPUT_SIZE, tb), lambda i: (0, i)),
            # Constant index map: packed weights DMA'd once, VMEM-resident.
            pl.BlockSpec((PACK_ROWS, PACK_COLS), lambda i: (0, 0)),
        ],
        out_specs=pl.BlockSpec((OUTPUT_SIZE, tb), lambda i: (0, i)),
        compiler_params=pltpu.CompilerParams(dimension_semantics=semantics),
        cost_estimate=cost,
    )(xt, packed)


@functools.partial(jax.jit, static_argnames=("max_tile", "use_bf16"))
def iris_forward_cm(xt, packed, *, max_tile=DEFAULT_MAX_TILE, use_bf16=False):
    """Transpose-free path: xt (4, B), packed (72, 128) -> (3, B) log-probs."""
    B = xt.shape[1]
    tb, num_tiles, b_pad = _choose_tiling(B, max_tile)
    xt = xt.astype(jnp.bfloat16 if use_bf16 else jnp.float32)
    if b_pad != B:
        xt = jnp.pad(xt, ((0, 0), (0, b_pad - B)))   # zero padding (keep zeros)
    out = _pallas_forward(xt, packed, tb, num_tiles, b_pad)
    return out[:, :B]


@functools.partial(jax.jit, static_argnames=("max_tile", "use_bf16"))
def iris_forward(x, packed, *, max_tile=DEFAULT_MAX_TILE, use_bf16=False):
    """PyTorch-layout wrapper: x (B, 4) -> (B, 3) log-probabilities.

    Prefer iris_forward_cm when the caller can produce feature-major inputs;
    this wrapper adds two small HBM transposes.
    """
    return iris_forward_cm(x.T, packed, max_tile=max_tile,
                           use_bf16=use_bf16).T


def init_params(key):
    """PyTorch nn.Linear-style init: weight (out,in), bias (out,), U(+/-1/sqrt(fan_in))."""
    ks = jax.random.split(key, 6)

    def linear(kw, kb, fan_in, fan_out):
        bound = 1.0 / np.sqrt(fan_in)
        w = jax.random.uniform(kw, (fan_out, fan_in), jnp.float32, -bound, bound)
        b = jax.random.uniform(kb, (fan_out,), jnp.float32, -bound, bound)
        return w, b

    w1, b1 = linear(ks[0], ks[1], INPUT_SIZE, HIDDEN_SIZE)
    w2, b2 = linear(ks[2], ks[3], HIDDEN_SIZE, HIDDEN_SIZE)
    w3, b3 = linear(ks[4], ks[5], HIDDEN_SIZE, OUTPUT_SIZE)
    return (w1, b1, w2, b2, w3, b3)


def pack_params(params):
    """Collapse the 6 tensors into one lane-dense (72, 128) f32 slab (1 DMA)."""
    w1, b1, w2, b2, w3, b3 = params
    packed = jnp.zeros((PACK_ROWS, PACK_COLS), jnp.float32)
    packed = packed.at[ROW_W1:ROW_W1 + HIDDEN_SIZE, 0:INPUT_SIZE].set(w1)
    packed = packed.at[ROW_W1:ROW_W1 + HIDDEN_SIZE, BIAS_COL].set(b1)
    packed = packed.at[ROW_W2:ROW_W2 + HIDDEN_SIZE, 0:HIDDEN_SIZE].set(w2)
    packed = packed.at[ROW_W2:ROW_W2 + HIDDEN_SIZE, BIAS_COL].set(b2)
    packed = packed.at[ROW_W3:ROW_W3 + OUTPUT_SIZE, 0:HIDDEN_SIZE].set(w3)
    packed = packed.at[ROW_W3:ROW_W3 + OUTPUT_SIZE, BIAS_COL].set(b3)
    return packed


def iris_reference(x, params):
    w1, b1, w2, b2, w3, b3 = params
    h1 = jax.nn.sigmoid(x @ w1.T + b1)
    h2 = jax.nn.sigmoid(h1 @ w2.T + b2)
    logits = h2 @ w3.T + b3
    return jax.nn.log_softmax(logits, axis=-1)


if __name__ == "__main__":
    key = jax.random.PRNGKey(0)
    k_params, k_x1, k_x2 = jax.random.split(key, 3)

    params = init_params(k_params)
    packed = pack_params(params)

    # Small batch: single (padded) 128-lane tile, "arbitrary" semantics.
    x_small = jax.random.normal(k_x1, (8, INPUT_SIZE), dtype=jnp.float32)
    out_small = jax.block_until_ready(iris_forward(x_small, packed))
    np.testing.assert_allclose(
        np.asarray(out_small), np.asarray(iris_reference(x_small, params)),
        rtol=1e-5, atol=1e-5)

    # Ragged batch with >=2 grid tiles: exercises padding, weight residency
    # across tiles, "parallel" (megacore) semantics and the transpose-free
    # class-major entry point.
    x_big = jax.random.normal(k_x2, (300, INPUT_SIZE), dtype=jnp.float32)
    ref_big = np.asarray(iris_reference(x_big, params))

    out_big = jax.block_until_ready(iris_forward(x_big, packed))
    np.testing.assert_allclose(np.asarray(out_big), ref_big,
                               rtol=1e-5, atol=1e-5)

    out_cm = jax.block_until_ready(iris_forward_cm(x_big.T, packed))
    np.testing.assert_allclose(np.asarray(out_cm).T, ref_big,
                               rtol=1e-5, atol=1e-5)

    # bf16 fast path (bf16 matmul operands, f32 accumulation / log-softmax);
    # tolerance loosened accordingly.
    out_bf16 = jax.block_until_ready(iris_forward(x_big, packed, use_bf16=True))
    np.testing.assert_allclose(np.asarray(out_bf16), ref_big,
                               rtol=5e-2, atol=5e-2)

    print("KERNEL_OK")
</pallas_src>

<mosaic_0001>
module attributes {stable_mosaic.version = 11 : i64} {
  func.func @iris_kernel(%arg0: i32, %arg1: memref<4x128xf32, #tpu.memory_space<vmem>>, %arg2: memref<72x128xf32, #tpu.memory_space<vmem>>, %arg3: memref<3x128xf32, #tpu.memory_space<vmem>>) attributes {dimension_semantics = [#tpu.dimension_semantics<arbitrary>], iteration_bounds = array<i64: 1>, scalar_prefetch = 0 : i64, scratch_operands = 0 : i64, tpu.core_type = #tpu.core_type<tc>, window_params = [{transform_indices = @transform_0, window_bounds = array<i64: 4, 128>}, {pipeline_mode = #tpu.pipeline_mode<synchronous>, transform_indices = @transform_1, window_bounds = array<i64: 72, 128>}, {transform_indices = @transform_2, window_bounds = array<i64: 3, 128>}]} {
    %c0 = arith.constant 0 : index
    %c0_0 = arith.constant 0 : index
    %0 = vector.load %arg2[%c0, %c0_0] : memref<72x128xf32, #tpu.memory_space<vmem>>, vector<30x4xf32>
    %c0_1 = arith.constant 0 : index
    %c32 = arith.constant 32 : index
    %1 = vector.load %arg2[%c0_1, %c32] : memref<72x128xf32, #tpu.memory_space<vmem>>, vector<30x1xf32>
    %c32_2 = arith.constant 32 : index
    %c0_3 = arith.constant 0 : index
    %2 = vector.load %arg2[%c32_2, %c0_3] : memref<72x128xf32, #tpu.memory_space<vmem>>, vector<30x30xf32>
    %c32_4 = arith.constant 32 : index
    %c32_5 = arith.constant 32 : index
    %3 = vector.load %arg2[%c32_4, %c32_5] : memref<72x128xf32, #tpu.memory_space<vmem>>, vector<30x1xf32>
    %c64 = arith.constant 64 : index
    %c0_6 = arith.constant 0 : index
    %4 = vector.load %arg2[%c64, %c0_6] : memref<72x128xf32, #tpu.memory_space<vmem>>, vector<3x30xf32>
    %c64_7 = arith.constant 64 : index
    %c32_8 = arith.constant 32 : index
    %5 = vector.load %arg2[%c64_7, %c32_8] : memref<72x128xf32, #tpu.memory_space<vmem>>, vector<3x1xf32>
    %c0_9 = arith.constant 0 : index
    %c0_10 = arith.constant 0 : index
    %6 = vector.load %arg1[%c0_9, %c0_10] : memref<4x128xf32, #tpu.memory_space<vmem>>, vector<4x128xf32>
    %cst = arith.constant dense<0.000000e+00> : vector<30x128xf32>
    %7 = tpu.matmul %0, %6, %cst {dimension_numbers = #tpu.dot_dimension_numbers<[1], [0], [0], [1], [0, 0, 1, 1], [], []>} : vector<30x4xf32>, vector<4x128xf32>, vector<30x128xf32> -> vector<30x128xf32>
    %8 = vector.broadcast %1 : vector<30x1xf32> to vector<30x128xf32>
    %9 = arith.addf %7, %8 : vector<30x128xf32>
    %cst_11 = arith.constant 5.000000e-01 : f32
    %10 = vector.broadcast %cst_11 : f32 to vector<30x128xf32>
    %11 = arith.mulf %10, %9 : vector<30x128xf32>
    %12 = math.tanh %11 : vector<30x128xf32>
    %cst_12 = arith.constant 5.000000e-01 : f32
    %13 = vector.broadcast %cst_12 : f32 to vector<30x128xf32>
    %14 = arith.mulf %13, %12 : vector<30x128xf32>
    %cst_13 = arith.constant 5.000000e-01 : f32
    %15 = vector.broadcast %cst_13 : f32 to vector<30x128xf32>
    %16 = arith.addf %14, %15 : vector<30x128xf32>
    %cst_14 = arith.constant dense<0.000000e+00> : vector<30x128xf32>
    %17 = tpu.matmul %2, %16, %cst_14 {dimension_numbers = #tpu.dot_dimension_numbers<[1], [0], [0], [1], [0, 0, 1, 1], [], []>} : vector<30x30xf32>, vector<30x128xf32>, vector<30x128xf32> -> vector<30x128xf32>
    %18 = vector.broadcast %3 : vector<30x1xf32> to vector<30x128xf32>
    %19 = arith.addf %17, %18 : vector<30x128xf32>
    %cst_15 = arith.constant 5.000000e-01 : f32
    %20 = vector.broadcast %cst_15 : f32 to vector<30x128xf32>
    %21 = arith.mulf %20, %19 : vector<30x128xf32>
    %22 = math.tanh %21 : vector<30x128xf32>
    %cst_16 = arith.constant 5.000000e-01 : f32
    %23 = vector.broadcast %cst_16 : f32 to vector<30x128xf32>
    %24 = arith.mulf %23, %22 : vector<30x128xf32>
    %cst_17 = arith.constant 5.000000e-01 : f32
    %25 = vector.broadcast %cst_17 : f32 to vector<30x128xf32>
    %26 = arith.addf %24, %25 : vector<30x128xf32>
    %cst_18 = arith.constant dense<0.000000e+00> : vector<3x128xf32>
    %27 = tpu.matmul %4, %26, %cst_18 {dimension_numbers = #tpu.dot_dimension_numbers<[1], [0], [0], [1], [0, 0, 1, 1], [], []>} : vector<3x30xf32>, vector<30x128xf32>, vector<3x128xf32> -> vector<3x128xf32>
    %28 = vector.broadcast %5 : vector<3x1xf32> to vector<3x128xf32>
    %29 = arith.addf %27, %28 : vector<3x128xf32>
    %cst_19 = arith.constant dense<0xFF800000> : vector<128xf32>
    %30 = vector.multi_reduction <maximumf>, %29, %cst_19 [0] : vector<3x128xf32> to vector<128xf32>
    %31 = vector.shape_cast %30 : vector<128xf32> to vector<1x128xf32>
    %32 = vector.broadcast %31 : vector<1x128xf32> to vector<3x128xf32>
    %33 = arith.subf %29, %32 : vector<3x128xf32>
    %34 = math.exp %33 : vector<3x128xf32>
    %cst_20 = arith.constant dense<0.000000e+00> : vector<128xf32>
    %35 = vector.multi_reduction <add>, %34, %cst_20 [0] : vector<3x128xf32> to vector<128xf32>
    %36 = vector.shape_cast %35 : vector<128xf32> to vector<1x128xf32>
    %37 = math.log %36 : vector<1x128xf32>
    %38 = vector.broadcast %37 : vector<1x128xf32> to vector<3x128xf32>
    %39 = arith.subf %33, %38 : vector<3x128xf32>
    %c0_21 = arith.constant 0 : index
    %c0_22 = arith.constant 0 : index
    %40 = vector.load %arg3[%c0_21, %c0_22] : memref<3x128xf32, #tpu.memory_space<vmem>>, vector<3x128xf32>
    tpu.vector_store %arg3[%c0_21, %c0_22], %39 {strides = array<i32>} : memref<3x128xf32, #tpu.memory_space<vmem>>, vector<3x128xf32>,
    return
  }
  func.func @transform_0(%arg0: i32) -> (i32, i32) {
    %c0_i32 = arith.constant 0 : i32
    %c0_i32_0 = arith.constant 0 : i32
    return %c0_i32, %arg0 : i32, i32
  }
  func.func @transform_1(%arg0: i32) -> (i32, i32) {
    %c0_i32 = arith.constant 0 : i32
    %c0_i32_0 = arith.constant 0 : i32
    %c0_i32_1 = arith.constant 0 : i32
    return %c0_i32, %c0_i32_0 : i32, i32
  }
  func.func @transform_2(%arg0: i32) -> (i32, i32) {
    %c0_i32 = arith.constant 0 : i32
    %c0_i32_0 = arith.constant 0 : i32
    return %c0_i32, %arg0 : i32, i32
  }
}

</mosaic_0001>

<bundles_post_ra>
// kernel: iris_forward_cm.1
= control target key start
LH: loop header
LB: loop body
LE: loop exit
PB: predicated region body
PF: predicated region fallthrough
CT: control target
= control target key end

     0   :  { %7 = vsyncpa [#allocation3], 0  ;;  %s401_s0 = inlined_call_operand.vmem [shape: f32[4,128], index: 0, kind: input, shape index: {}]   ;;  %s402_s1 = inlined_call_operand.hbm [shape: f32[72,128], index: 1, kind: input, shape index: {}]   ;;  %s403_s2 = inlined_call_operand.hbm [shape: f32[3,128], index: 2, kind: output, shape index: {}]  }
   0x1   :  { %8 = vsyncpa [#allocation4], 0  ;;  %s15_s11 = sshll.u32 %s402_s1, 4  ;;  %s360_s12 = smov [#allocation2]   ;;  %s16_s11 = int_to_ptr.hbm [resolvable:$true] %s15_s11 }
   0x2   :  { %s17_s13 = sshll.u32 %s360_s12, 4  ;;  %s361_s14 = smov 128   ;;  %s18_s13 = int_to_ptr.vmem [resolvable:$true] %s17_s13 }
   0x3   :  { %s362_s15 = smov 8  }
   0x4   :  { %23 = dma.hbm_to_vmem [thread:$0]  %s16_s11, 1152, %s18_s13, [#allocation3], %s361_s14, %s361_s14, %s362_s15  }
   0x5   :  { %356 = dma.done.wait [#allocation3], 1152  }
   0x6   :  { %357 = vsyncadd [#allocation3], 4294966144  ;;  %v363_v0 = vmov 32   ;;  %vm67_vm0 = vcmask 1043456   ;;  %vm58_vm1 = vcmask 31744   ;;  %v28_v2 = vld [vmem:[#allocation2] sm:$0xff] }
   0x7   :  { %286 = vset.pattern.permute.xlu1 %v363_v0  ;;  %285 = vset.pattern.permute.xlu0 %v363_v0  ;;  %v37_v1 = vld [vmem:[%s401_s0] sm:$0xf]  ;;  %v31_v3 = vld [vmem:[#allocation2 + $0x18] sm:$0x3f]  ;;  %v29_v4 = vld [vmem:[#allocation2 + $0x8] sm:$0xff]  ;;  %vm145_vm2 = vcmask 1045504  }
   0x8   :  { %287 = vset.pattern.permute.xlu2 %v363_v0  ;;  %263 = vmatpush.msk.msra.mxu0 %vm67_vm0, %v37_v1  ;;  %v30_v5 = vld [vmem:[#allocation2 + $0x10] sm:$0xff]  ;;  %v33_v6 = vld [vmem:[#allocation2 + $0x28] sm:$0xff]  ;;  %v32_v7 = vld [vmem:[#allocation2 + $0x20] sm:$0xff]  ;;  %vm136_vm3 = vcmask 244736   ;;  %vm224_vm4 = vcmask 1042432   ;;  %s364_s0 = smov [#allocation5]  }
   0x9   :  { %275 = vmatpush.msk.msra.mxu2 %vm67_vm0, %v37_v1  ;;  %264 = vmatmul.msk.f32.vlgmr.msra.gmra.mxu0 %vm58_vm1, %v28_v2  ;;  %v35_v18 = vld [vmem:[#allocation2 + $0x38] sm:$0x3f]  ;;  %v34_v28 = vld [vmem:[#allocation2 + $0x30] sm:$0xff]  ;;  %v36_v31 = vld [vmem:[#allocation2 + $0x40] sm:$0x7]  ;;  %s251_s1 = sshll.u32 %s364_s0, 4  ;;  %s252_s1 = int_to_ptr.vmem [resolvable:$true] %s251_s1 }
   0xa   :  { %267 = vmatmul.msk.f32.vlgmr.msra.gmra.mxu2 %vm58_vm1, %v31_v3  ;;  %55 = vperm.xlu0 %285, %v31_v3   ;;  %s253_s20 = sshll.u32 %s403_s2, 4  ;;  %s254_s20 = int_to_ptr.hbm [resolvable:$true] %s253_s20 }
   0xb   :  { %45 = vperm.xlu1 %286, %v29_v4   ;;  %133 = vperm.xlu2 %287, %v35_v18  }
  0x11   :  { %265 = vmatmul.msk.f32.gmra.mxu0 %vm58_vm1, %v29_v4 }
  0x12   :  { %50 = vperm.xlu0 %285, %v30_v5  }
  0x13   :  { %40 = vperm.xlu1 %286, %v28_v2   ;;  %128 = vperm.xlu2 %287, %v34_v28  }
  0x19   :  { %266 = vmatmul.msk.f32.gmra.mxu0 %vm58_vm1, %v30_v5 }
  0x1a   :  { %123 = vperm.xlu0 %285, %v33_v6  }
  0x1b   :  { %118 = vperm.xlu1 %286, %v32_v7   ;;  %196 = vperm.xlu2 %287, %v36_v31  }
  0x65   :  { %v134_v39 = vpop.permute.xlu2 %133 }
  0x6d   :  { %v129_v42 = vpop.permute.xlu2 %128 }
  0x75   :  { %v197_v3 = vpop.permute.xlu2 %196 }
  0x7c   :  { %v56_v10 = vpop.permute.xlu0 %55 }
  0x7d   :  { %v46_v8 = vpop.permute.xlu1 %45 }
  0x84   :  { %v51_v20 = vpop.permute.xlu0 %50 }
  0x85   :  { %v41_v14 = vpop.permute.xlu1 %40 }
  0x86   :  { %v88_v9 = vpop.f32.mrf.mxu0 }
  0x87   :  { %v89_v17 = vadd.f32 %v88_v9, %v41_v14 }
  0x89   :  { %v100_v21 = vmul.f32 0.5, %v89_v17 }
  0x8c   :  { %v124_v44 = vpop.permute.xlu0 %123 }
  0x8d   :  { %v97_v11 = vpop.f32.mrf.mxu2  ;;  %v119_v47 = vpop.permute.xlu1 %118 }
  0x8e   :  { %v98_v12 = vadd.f32 %v97_v11, %v56_v10  ;;  %v91_v13 = vpop.f32.mrf.mxu0 }
  0x8f   :  { %v92_v16 = vadd.f32 %v91_v13, %v46_v8 }
  0x90   :  { %v103_v15 = vmul.f32 0.5, %v98_v12 }
  0x91   :  { %v101_v19 = vmul.f32 0.5, %v92_v16 }
  0x92   :  { %288 = vtanh.f32 %v103_v15 }
  0x93   :  { %290 = vtanh.f32 %v101_v19 }
  0x94   :  { %292 = vtanh.f32 %v100_v21 }
  0x96   :  { %v94_v22 = vpop.f32.mrf.mxu0 }
  0x97   :  { %v95_v24 = vadd.f32 %v94_v22, %v51_v20 }
  0x98   :  { %v289_v23 = vpop.eup %288 }
  0x99   :  { %v111_v25 = vmul.f32 0.5, %v289_v23  ;;  %v102_v26 = vmul.f32 0.5, %v95_v24  ;;  %v291_v29 = vpop.eup %290 }
  0x9a   :  { %v293_v30 = vpop.eup %292  ;;  %v109_v34 = vmul.f32 0.5, %v291_v29 }
  0x9b   :  { %v115_v27 = vadd.f32 0.5, %v111_v25  ;;  %294 = vtanh.f32 %v102_v26  ;;  %v108_v36 = vmul.f32 0.5, %v293_v30 }
  0x9c   :  { %v113_v37 = vadd.f32 0.5, %v109_v34 }
  0x9d   :  { %268 = vmatpush.msk.msra.mxu1 %vm145_vm2, %v115_v27  ;;  %276 = vmatpush.msk.msra.mxu3 %vm145_vm2, %v115_v27  ;;  %v112_v38 = vadd.f32 0.5, %v108_v36 }
  0xa1   :  { %v295_v32 = vpop.eup %294 }
  0xa2   :  { %v110_v33 = vmul.f32 0.5, %v295_v32 }
  0xa4   :  { %v114_v35 = vadd.f32 0.5, %v110_v33 }
  0xa6   :  { %162 = vmatpush.msra.mxu1 %v114_v35  ;;  %277 = vmatpush.msra.mxu3 %v114_v35 }
  0xa8   :  { %163 = vmatpush.msra.mxu1 %v113_v37  ;;  %278 = vmatpush.msra.mxu3 %v113_v37 }
  0xaa   :  { %164 = vmatpush.msra.mxu1 %v112_v38  ;;  %279 = vmatpush.msra.mxu3 %v112_v38 }
  0xab   :  { %269 = vmatmul.msk.f32.vlgmr.msra.gmra.mxu1 %vm136_vm3, %v32_v7  ;;  %271 = vmatmul.msk.f32.vlgmr.msra.gmra.mxu3 %vm136_vm3, %v34_v28 }
  0xb3   :  { %270 = vmatmul.msk.f32.gmra.mxu1 %vm136_vm3, %v33_v6  ;;  %272 = vmatmul.msk.f32.gmra.mxu3 %vm136_vm3, %v35_v18 }
 0x128   :  { %v166_v40 = vpop.f32.mrf.mxu1 }
 0x129   :  { %v167_v48 = vadd.f32 %v166_v40, %v119_v47 }
 0x12b   :  { %v178_v53 = vmul.f32 0.5, %v167_v48 }
 0x12e   :  { %v172_v41 = vpop.f32.mrf.mxu3 }
 0x12f   :  { %v173_v45 = vadd.f32 %v172_v41, %v129_v42 }
 0x130   :  { %v169_v43 = vpop.f32.mrf.mxu1 }
 0x131   :  { %v170_v46 = vadd.f32 %v169_v43, %v124_v44  ;;  %v180_v49 = vmul.f32 0.5, %v173_v45 }
 0x133   :  { %v179_v50 = vmul.f32 0.5, %v170_v46  ;;  %296 = vtanh.f32 %v180_v49 }
 0x135   :  { %298 = vtanh.f32 %v179_v50 }
 0x136   :  { %v175_v51 = vpop.f32.mrf.mxu3 }
 0x137   :  { %v176_v52 = vadd.f32 %v175_v51, %v134_v39 }
 0x139   :  { %v181_v54 = vmul.f32 0.5, %v176_v52  ;;  %v297_v55 = vpop.eup %296 }
 0x13a   :  { %v188_v59 = vmul.f32 0.5, %v297_v55 }
 0x13b   :  { %300 = vtanh.f32 %v181_v54  ;;  %v299_v56 = vpop.eup %298 }
 0x13c   :  { %302 = vtanh.f32 %v178_v53  ;;  %v187_v62 = vmul.f32 0.5, %v299_v56  ;;  %v192_v63 = vadd.f32 0.5, %v188_v59 }
 0x13e   :  { %v191_v1 = vadd.f32 0.5, %v187_v62 }
 0x141   :  { %v301_v57 = vpop.eup %300 }
 0x142   :  { %v189_v58 = vmul.f32 0.5, %v301_v57  ;;  %v303_v60 = vpop.eup %302 }
 0x143   :  { %v186_v0 = vmul.f32 0.5, %v303_v60 }
 0x144   :  { %v193_v61 = vadd.f32 0.5, %v189_v58 }
 0x145   :  { %v190_v2 = vadd.f32 0.5, %v186_v0 }
 0x146   :  { %273 = vmatpush.msk.msrb.mxu2 %vm145_vm2, %v193_v61 }
 0x148   :  { %217 = vmatpush.msrb.mxu2 %v192_v63 }
 0x14a   :  { %218 = vmatpush.msrb.mxu2 %v191_v1 }
 0x14c   :  { %219 = vmatpush.msrb.mxu2 %v190_v2 }
 0x14d   :  { %274 = vmatmul.msk.f32.vlgmr.msrb.gmra.mxu2 %vm136_vm3, %v36_v31 }
 0x1d0   :  { %v221_v4 = vpop.f32.mrf.mxu2 }
 0x1d1   :  { %v222_v5 = vadd.f32 %v221_v4, %v197_v3 }
 0x1d3   :  { %v225_v6 = vsel %vm224_vm4, %v222_v5, -inf }
 0x1d4   :  { %v226_v7 = vrot.slane %v225_v6, 4 }
 0x1d6   :  { %v227_v8 = vmax.f32 %v225_v6, %v226_v7 }
 0x1d8   :  { %v228_v9 = vrot.slane %v227_v8, 2 }
 0x1da   :  { %v229_v10 = vmax.f32 %v227_v8, %v228_v9 }
 0x1dc   :  { %v230_v11 = vrot.slane %v229_v10, 1 }
 0x1de   :  { %v231_v12 = vmax.f32 %v229_v10, %v230_v11 }
 0x1e0   :  { %v232_v13 = vsub.f32 %v222_v5, %v231_v12 }
 0x1e2   :  { %v233_v14 = vmul.f32 1.442695, %v232_v13 }
 0x1e4   :  { %304 = vpow2.f32 %v233_v14 }
 0x1ea   :  { %v305_v15 = vpop.eup %304 }
 0x1eb   :  { %v235_v16 = vsel %vm224_vm4, %v305_v15, 0.0 }
 0x1ec   :  { %v236_v17 = vrot.slane %v235_v16, 4 }
 0x1ee   :  { %v237_v18 = vadd.f32 %v236_v17, %v235_v16 }
 0x1f0   :  { %v238_v19 = vrot.slane %v237_v18, 2 }
 0x1f2   :  { %v239_v20 = vadd.f32 %v238_v19, %v237_v18 }
 0x1f4   :  { %v240_v21 = vrot.slane %v239_v20, 1 }
 0x1f6   :  { %v241_v22 = vadd.f32 %v240_v21, %v239_v20 }
 0x1f8   :  { %306 = vlog2.f32 %v241_v22 }
 0x1fe   :  { %v307_v23 = vpop.eup %306 }
 0x1ff   :  { %v243_v24 = vmul.f32 0.6931472, %v307_v23 }
 0x201   :  { %v244_v25 = vsub.f32 %v232_v13, %v243_v24 }
 0x203   :  { %245 = vst [vmem:[#allocation5] sm:$0x7] %v244_v25 }
 0x204   :  { %256 = dma.vmem_to_hbm [thread:$0]  %s252_s1, 64, %s254_s20, [#allocation4]  }
 0x205   :  { %358 = dma.done.wait [#allocation4], 64  }
 0x206   :  { %359 = vsyncadd [#allocation4], 4294967232 }
 0x207   :  { %261 = vsyncpa [#allocation3], 1 }
 0x208   :  { %262 = vsyncpa [#allocation4], 1 }

</bundles_post_ra>
